<compile_context>
chip_gen: v6e
topology: v6e:2x2x1
jax: 0.10.0
libtpu: 0.0.40
codegen_flags: <defaults>
</compile_context>

<pallas_src>
import functools

import jax
import jax.numpy as jnp
from jax import lax
from jax.experimental import pallas as pl
from jax.experimental.pallas import tpu as pltpu

NUM_GROUPS = 8
KSIZE = 7
PAD = 3
EPS = 1e-5
NEG_SLOPE = 0.2


def _decoder_kernel(x_ref, w_ref, b_ref, gamma_ref, beta_ref, gmat_ref,
                    mask_ref, o_ref, *, Bt, C, L, P):
    """Bt batch elements: LeakyReLU -> GroupNorm(8) -> Conv1d(k=7, pad=3)."""
    gamma = gamma_ref[...]                 # (C, 1)
    beta = beta_ref[...]                   # (C, 1)
    gmat = gmat_ref[...]                   # (C, C) group-indicator (reduce + broadcast)
    mask = mask_ref[...]                   # (KSIZE, L) valid-lane masks per tap
    inv_n = 1.0 / float((C // NUM_GROUPS) * L)

    cols = []
    for b in range(Bt):
        x = x_ref[b]                                     # (C, L)
        a = jnp.where(x >= 0, x, NEG_SLOPE * x)          # LeakyReLU(0.2)  (VPU)

        # ---- GroupNorm(8, C): two-pass mean / variance (cancellation-safe) ----
        s = jnp.sum(a, axis=1, keepdims=True)            # (C, 1)
        mean = jnp.dot(gmat, s, preferred_element_type=jnp.float32) * inv_n
        d0 = a - mean
        sq = jnp.sum(d0 * d0, axis=1, keepdims=True)     # (C, 1)
        var = jnp.dot(gmat, sq, preferred_element_type=jnp.float32) * inv_n
        xn = d0 * lax.rsqrt(var + EPS) * gamma + beta    # (C, L)

        # ---- Conv1d taps: shifted copies via XLU roll + mask, stacked on channels ----
        chunks = []
        for k in range(KSIZE):
            d = k - PAD
            r = xn if d == 0 else pltpu.roll(xn, shift=(-d) % L, axis=1)
            chunks.append(r * mask[k:k + 1, :])          # zero the wrapped lanes
        cols.append(jnp.concatenate(chunks, axis=0))     # (7*C, L)

    # Single fused MXU matmul over all taps and all Bt batch elements.
    stacked = jnp.concatenate(cols, axis=1)              # (7*C, Bt*L)
    out = jnp.dot(w_ref[...], stacked,
                  preferred_element_type=jnp.float32)    # (P, Bt*L)
    bias = b_ref[...]                                    # (P, 1)
    for b in range(Bt):
        o_ref[b] = (out[:, b * L:(b + 1) * L] + bias).astype(o_ref.dtype)


def _pick_block(B):
    """Largest Bt <= min(8, B//2) that divides B (keeps >= 2 grid steps for megacore)."""
    if B <= 2:
        return 1
    target = min(8, B // 2)
    for bt in range(target, 0, -1):
        if B % bt == 0:
            return bt
    return 1


def multi_branch_prob_decoder(x, w, b, gamma, beta):
    """x: (B, C, L) f32; w: (P, C, 7); b: (P,); gamma/beta: (C,). Returns (B, P, L)."""
    B, C, L = x.shape
    P = w.shape[0]
    assert C % NUM_GROUPS == 0
    Bt = _pick_block(B)

    # Fused conv weights: w_fused[p, k*C + c] = w[p, c, k]  -> one K = 7*C contraction.
    w_fused = jnp.transpose(w, (0, 2, 1)).reshape(P, KSIZE * C).astype(jnp.float32)
    b2 = b.reshape(P, 1).astype(jnp.float32)
    g2 = gamma.reshape(C, 1).astype(jnp.float32)
    be2 = beta.reshape(C, 1).astype(jnp.float32)
    cg = C // NUM_GROUPS
    grp = jnp.arange(C) // cg
    gmat = (grp[:, None] == grp[None, :]).astype(jnp.float32)          # (C, C)
    # Valid-lane mask per tap k: 1 where 0 <= l + (k - PAD) < L.
    lane = jnp.arange(L)[None, :]
    off = (jnp.arange(KSIZE) - PAD)[:, None]
    mask = ((lane + off >= 0) & (lane + off < L)).astype(jnp.float32)  # (7, L)

    kernel = functools.partial(_decoder_kernel, Bt=Bt, C=C, L=L, P=P)

    # TODO(synk): for bf16-native MXU throughput (v6e/v7x) cast xn / w_fused to bf16 with
    # f32 accumulation; kept f32 here to stay within the 1e-4 reference tolerance.
    return pl.pallas_call(
        kernel,
        out_shape=jax.ShapeDtypeStruct((B, P, L), jnp.float32),
        grid=(B // Bt,),
        in_specs=[
            pl.BlockSpec((Bt, C, L), lambda i: (i, 0, 0)),       # x (batch block)
            pl.BlockSpec((P, KSIZE * C), lambda i: (0, 0)),      # fused conv weights
            pl.BlockSpec((P, 1), lambda i: (0, 0)),              # bias
            pl.BlockSpec((C, 1), lambda i: (0, 0)),              # gamma
            pl.BlockSpec((C, 1), lambda i: (0, 0)),              # beta
            pl.BlockSpec((C, C), lambda i: (0, 0)),              # group indicator
            pl.BlockSpec((KSIZE, L), lambda i: (0, 0)),          # roll masks
        ],
        out_specs=pl.BlockSpec((Bt, P, L), lambda i: (i, 0, 0)),
        compiler_params=pltpu.CompilerParams(
            dimension_semantics=("parallel",)),
    )(x.astype(jnp.float32), w_fused, b2, g2, be2, gmat, mask)


def _reference(x, w, b, gamma, beta):
    """Pure-JAX reference matching PyTorch semantics."""
    B, C, L = x.shape
    a = jnp.where(x >= 0, x, NEG_SLOPE * x)
    ag = a.reshape(B, NUM_GROUPS, C // NUM_GROUPS, L)
    mean = ag.mean(axis=(2, 3), keepdims=True)
    var = ag.var(axis=(2, 3), keepdims=True)
    xn = ((ag - mean) / jnp.sqrt(var + EPS)).reshape(B, C, L)
    xn = xn * gamma[None, :, None] + beta[None, :, None]
    out = lax.conv_general_dilated(
        xn, w, window_strides=(1,), padding=[(PAD, PAD)],
        dimension_numbers=("NCH", "OIH", "NCH"))
    return out + b[None, :, None]


if __name__ == "__main__":
    B, C, L, P = 2, 32, 128, 16   # batch, penulti_dim, seq_len, probabilistic_outputs

    key = jax.random.PRNGKey(0)
    kx, kw, kb, kg, kbe = jax.random.split(key, 5)
    x = jax.random.normal(kx, (B, C, L), dtype=jnp.float32)
    w = 0.05 * jax.random.normal(kw, (P, C, KSIZE), dtype=jnp.float32)
    b = 0.01 * jax.random.normal(kb, (P,), dtype=jnp.float32)
    gamma = 1.0 + 0.1 * jax.random.normal(kg, (C,), dtype=jnp.float32)
    beta = 0.1 * jax.random.normal(kbe, (C,), dtype=jnp.float32)

    out = multi_branch_prob_decoder(x, w, b, gamma, beta)
    out = jax.block_until_ready(out)

    ref = _reference(x, w, b, gamma, beta)
    assert out.shape == (B, P, L)
    assert jnp.allclose(out, ref, atol=1e-4, rtol=1e-4), float(jnp.max(jnp.abs(out - ref)))
    print("KERNEL_OK")
</pallas_src>

<mosaic_0001>
module attributes {stable_mosaic.version = 11 : i64} {
  func.func @_decoder_kernel(%arg0: i32, %arg1: memref<1x32x128xf32, #tpu.memory_space<vmem>>, %arg2: memref<16x224xf32, #tpu.memory_space<vmem>>, %arg3: memref<16x1xf32, #tpu.memory_space<vmem>>, %arg4: memref<32x1xf32, #tpu.memory_space<vmem>>, %arg5: memref<32x1xf32, #tpu.memory_space<vmem>>, %arg6: memref<32x32xf32, #tpu.memory_space<vmem>>, %arg7: memref<7x128xf32, #tpu.memory_space<vmem>>, %arg8: memref<1x16x128xf32, #tpu.memory_space<vmem>>) attributes {dimension_semantics = [#tpu.dimension_semantics<parallel>], iteration_bounds = array<i64: 2>, scalar_prefetch = 0 : i64, scratch_operands = 0 : i64, tpu.core_type = #tpu.core_type<tc>, window_params = [{transform_indices = @transform_0, window_bounds = array<i64: 1, 32, 128>}, {pipeline_mode = #tpu.pipeline_mode<synchronous>, transform_indices = @transform_1, window_bounds = array<i64: 16, 224>}, {pipeline_mode = #tpu.pipeline_mode<synchronous>, transform_indices = @transform_2, window_bounds = array<i64: 16, 1>}, {pipeline_mode = #tpu.pipeline_mode<synchronous>, transform_indices = @transform_3, window_bounds = array<i64: 32, 1>}, {pipeline_mode = #tpu.pipeline_mode<synchronous>, transform_indices = @transform_4, window_bounds = array<i64: 32, 1>}, {pipeline_mode = #tpu.pipeline_mode<synchronous>, transform_indices = @transform_5, window_bounds = array<i64: 32, 32>}, {pipeline_mode = #tpu.pipeline_mode<synchronous>, transform_indices = @transform_6, window_bounds = array<i64: 7, 128>}, {transform_indices = @transform_7, window_bounds = array<i64: 1, 16, 128>}]} {
    %c0 = arith.constant 0 : index
    %c0_0 = arith.constant 0 : index
    %0 = vector.load %arg4[%c0, %c0_0] : memref<32x1xf32, #tpu.memory_space<vmem>>, vector<32x1xf32>
    %c0_1 = arith.constant 0 : index
    %c0_2 = arith.constant 0 : index
    %1 = vector.load %arg5[%c0_1, %c0_2] : memref<32x1xf32, #tpu.memory_space<vmem>>, vector<32x1xf32>
    %c0_3 = arith.constant 0 : index
    %c0_4 = arith.constant 0 : index
    %2 = vector.load %arg6[%c0_3, %c0_4] : memref<32x32xf32, #tpu.memory_space<vmem>>, vector<32x32xf32>
    %c0_5 = arith.constant 0 : index
    %c0_6 = arith.constant 0 : index
    %3 = vector.load %arg7[%c0_5, %c0_6] : memref<7x128xf32, #tpu.memory_space<vmem>>, vector<7x128xf32>
    %c0_7 = arith.constant 0 : index
    %c0_8 = arith.constant 0 : index
    %c0_9 = arith.constant 0 : index
    %4 = vector.load %arg1[%c0_7, %c0_8, %c0_9] : memref<1x32x128xf32, #tpu.memory_space<vmem>>, vector<1x32x128xf32>
    %5 = vector.shape_cast %4 : vector<1x32x128xf32> to vector<32x128xf32>
    %cst = arith.constant 0.000000e+00 : f32
    %6 = vector.broadcast %cst : f32 to vector<32x128xf32>
    %7 = arith.cmpf oge, %5, %6 : vector<32x128xf32>
    %cst_10 = arith.constant 2.000000e-01 : f32
    %8 = vector.broadcast %cst_10 : f32 to vector<32x128xf32>
    %9 = arith.mulf %8, %5 : vector<32x128xf32>
    %10 = arith.select %7, %5, %9 : vector<32x128xi1>, vector<32x128xf32>
    %cst_11 = arith.constant dense<0.000000e+00> : vector<32xf32>
    %11 = vector.multi_reduction <add>, %10, %cst_11 [1] : vector<32x128xf32> to vector<32xf32>
    %12 = vector.shape_cast %11 : vector<32xf32> to vector<32x1xf32>
    %cst_12 = arith.constant dense<0.000000e+00> : vector<32x1xf32>
    %13 = tpu.matmul %2, %12, %cst_12 {dimension_numbers = #tpu.dot_dimension_numbers<[1], [0], [0], [1], [0, 0, 1, 1], [], []>} : vector<32x32xf32>, vector<32x1xf32>, vector<32x1xf32> -> vector<32x1xf32>
    %cst_13 = arith.constant 0.001953125 : f32
    %14 = vector.broadcast %cst_13 : f32 to vector<32x1xf32>
    %15 = arith.mulf %13, %14 : vector<32x1xf32>
    %16 = vector.broadcast %15 : vector<32x1xf32> to vector<32x128xf32>
    %17 = arith.subf %10, %16 : vector<32x128xf32>
    %18 = arith.mulf %17, %17 : vector<32x128xf32>
    %cst_14 = arith.constant dense<0.000000e+00> : vector<32xf32>
    %19 = vector.multi_reduction <add>, %18, %cst_14 [1] : vector<32x128xf32> to vector<32xf32>
    %20 = vector.shape_cast %19 : vector<32xf32> to vector<32x1xf32>
    %cst_15 = arith.constant dense<0.000000e+00> : vector<32x1xf32>
    %21 = tpu.matmul %2, %20, %cst_15 {dimension_numbers = #tpu.dot_dimension_numbers<[1], [0], [0], [1], [0, 0, 1, 1], [], []>} : vector<32x32xf32>, vector<32x1xf32>, vector<32x1xf32> -> vector<32x1xf32>
    %cst_16 = arith.constant 0.001953125 : f32
    %22 = vector.broadcast %cst_16 : f32 to vector<32x1xf32>
    %23 = arith.mulf %21, %22 : vector<32x1xf32>
    %cst_17 = arith.constant 9.99999974E-6 : f32
    %24 = vector.broadcast %cst_17 : f32 to vector<32x1xf32>
    %25 = arith.addf %23, %24 : vector<32x1xf32>
    %26 = math.rsqrt %25 : vector<32x1xf32>
    %27 = vector.broadcast %26 : vector<32x1xf32> to vector<32x128xf32>
    %28 = arith.mulf %17, %27 : vector<32x128xf32>
    %29 = vector.broadcast %0 : vector<32x1xf32> to vector<32x128xf32>
    %30 = arith.mulf %28, %29 : vector<32x128xf32>
    %31 = vector.broadcast %1 : vector<32x1xf32> to vector<32x128xf32>
    %32 = arith.addf %30, %31 : vector<32x128xf32>
    %c3_i32 = arith.constant 3 : i32
    %33 = tpu.dynamic_rotate %32 by %c3_i32 dim 1 : vector<32x128xf32>, i32 -> vector<32x128xf32>
    %34 = vector.extract_strided_slice %3 {offsets = [0, 0], sizes = [1, 128], strides = [1, 1]} : vector<7x128xf32> to vector<1x128xf32>
    %35 = vector.broadcast %34 : vector<1x128xf32> to vector<32x128xf32>
    %36 = arith.mulf %33, %35 : vector<32x128xf32>
    %c2_i32 = arith.constant 2 : i32
    %37 = tpu.dynamic_rotate %32 by %c2_i32 dim 1 : vector<32x128xf32>, i32 -> vector<32x128xf32>
    %38 = vector.extract_strided_slice %3 {offsets = [1, 0], sizes = [1, 128], strides = [1, 1]} : vector<7x128xf32> to vector<1x128xf32>
    %39 = vector.broadcast %38 : vector<1x128xf32> to vector<32x128xf32>
    %40 = arith.mulf %37, %39 : vector<32x128xf32>
    %c1_i32 = arith.constant 1 : i32
    %41 = tpu.dynamic_rotate %32 by %c1_i32 dim 1 : vector<32x128xf32>, i32 -> vector<32x128xf32>
    %42 = vector.extract_strided_slice %3 {offsets = [2, 0], sizes = [1, 128], strides = [1, 1]} : vector<7x128xf32> to vector<1x128xf32>
    %43 = vector.broadcast %42 : vector<1x128xf32> to vector<32x128xf32>
    %44 = arith.mulf %41, %43 : vector<32x128xf32>
    %45 = vector.extract_strided_slice %3 {offsets = [3, 0], sizes = [1, 128], strides = [1, 1]} : vector<7x128xf32> to vector<1x128xf32>
    %46 = vector.broadcast %45 : vector<1x128xf32> to vector<32x128xf32>
    %47 = arith.mulf %32, %46 : vector<32x128xf32>
    %c127_i32 = arith.constant 127 : i32
    %48 = tpu.dynamic_rotate %32 by %c127_i32 dim 1 : vector<32x128xf32>, i32 -> vector<32x128xf32>
    %49 = vector.extract_strided_slice %3 {offsets = [4, 0], sizes = [1, 128], strides = [1, 1]} : vector<7x128xf32> to vector<1x128xf32>
    %50 = vector.broadcast %49 : vector<1x128xf32> to vector<32x128xf32>
    %51 = arith.mulf %48, %50 : vector<32x128xf32>
    %c126_i32 = arith.constant 126 : i32
    %52 = tpu.dynamic_rotate %32 by %c126_i32 dim 1 : vector<32x128xf32>, i32 -> vector<32x128xf32>
    %53 = vector.extract_strided_slice %3 {offsets = [5, 0], sizes = [1, 128], strides = [1, 1]} : vector<7x128xf32> to vector<1x128xf32>
    %54 = vector.broadcast %53 : vector<1x128xf32> to vector<32x128xf32>
    %55 = arith.mulf %52, %54 : vector<32x128xf32>
    %c125_i32 = arith.constant 125 : i32
    %56 = tpu.dynamic_rotate %32 by %c125_i32 dim 1 : vector<32x128xf32>, i32 -> vector<32x128xf32>
    %57 = vector.extract_strided_slice %3 {offsets = [6, 0], sizes = [1, 128], strides = [1, 1]} : vector<7x128xf32> to vector<1x128xf32>
    %58 = vector.broadcast %57 : vector<1x128xf32> to vector<32x128xf32>
    %59 = arith.mulf %56, %58 : vector<32x128xf32>
    %60 = tpu.concatenate %36, %40, %44, %47, %51, %55, %59 in 0 : vector<32x128xf32>, vector<32x128xf32>, vector<32x128xf32>, vector<32x128xf32>, vector<32x128xf32>, vector<32x128xf32>, vector<32x128xf32> -> vector<224x128xf32>
    %c0_18 = arith.constant 0 : index
    %c0_19 = arith.constant 0 : index
    %61 = vector.load %arg2[%c0_18, %c0_19] : memref<16x224xf32, #tpu.memory_space<vmem>>, vector<16x224xf32>
    %cst_20 = arith.constant dense<0.000000e+00> : vector<16x128xf32>
    %62 = tpu.matmul %61, %60, %cst_20 {dimension_numbers = #tpu.dot_dimension_numbers<[1], [0], [0], [1], [0, 0, 1, 1], [], []>} : vector<16x224xf32>, vector<224x128xf32>, vector<16x128xf32> -> vector<16x128xf32>
    %c0_21 = arith.constant 0 : index
    %c0_22 = arith.constant 0 : index
    %63 = vector.load %arg3[%c0_21, %c0_22] : memref<16x1xf32, #tpu.memory_space<vmem>>, vector<16x1xf32>
    %64 = vector.broadcast %63 : vector<16x1xf32> to vector<16x128xf32>
    %65 = arith.addf %62, %64 : vector<16x128xf32>
    %c0_23 = arith.constant 0 : index
    %c0_24 = arith.constant 0 : index
    %c0_25 = arith.constant 0 : index
    %66 = vector.load %arg8[%c0_23, %c0_24, %c0_25] : memref<1x16x128xf32, #tpu.memory_space<vmem>>, vector<1x16x128xf32>
    %67 = vector.shape_cast %66 : vector<1x16x128xf32> to vector<16x128xf32>
    %68 = vector.shape_cast %65 : vector<16x128xf32> to vector<1x16x128xf32>
    tpu.vector_store %arg8[%c0_23, %c0_24, %c0_25], %68 {strides = array<i32>} : memref<1x16x128xf32, #tpu.memory_space<vmem>>, vector<1x16x128xf32>,
    return
  }
  func.func @transform_0(%arg0: i32) -> (i32, i32, i32) {
    %c0_i32 = arith.constant 0 : i32
    %c0_i32_0 = arith.constant 0 : i32
    %c0_i32_1 = arith.constant 0 : i32
    return %arg0, %c0_i32, %c0_i32_0 : i32, i32, i32
  }
  func.func @transform_1(%arg0: i32) -> (i32, i32) {
    %c0_i32 = arith.constant 0 : i32
    %c0_i32_0 = arith.constant 0 : i32
    %c0_i32_1 = arith.constant 0 : i32
    return %c0_i32, %c0_i32_0 : i32, i32
  }
  func.func @transform_2(%arg0: i32) -> (i32, i32) {
    %c0_i32 = arith.constant 0 : i32
    %c0_i32_0 = arith.constant 0 : i32
    %c0_i32_1 = arith.constant 0 : i32
    return %c0_i32, %c0_i32_0 : i32, i32
  }
  func.func @transform_3(%arg0: i32) -> (i32, i32) {
    %c0_i32 = arith.constant 0 : i32
    %c0_i32_0 = arith.constant 0 : i32
    %c0_i32_1 = arith.constant 0 : i32
    return %c0_i32, %c0_i32_0 : i32, i32
  }
  func.func @transform_4(%arg0: i32) -> (i32, i32) {
    %c0_i32 = arith.constant 0 : i32
    %c0_i32_0 = arith.constant 0 : i32
    %c0_i32_1 = arith.constant 0 : i32
    return %c0_i32, %c0_i32_0 : i32, i32
  }
  func.func @transform_5(%arg0: i32) -> (i32, i32) {
    %c0_i32 = arith.constant 0 : i32
    %c0_i32_0 = arith.constant 0 : i32
    %c0_i32_1 = arith.constant 0 : i32
    return %c0_i32, %c0_i32_0 : i32, i32
  }
  func.func @transform_6(%arg0: i32) -> (i32, i32) {
    %c0_i32 = arith.constant 0 : i32
    %c0_i32_0 = arith.constant 0 : i32
    %c0_i32_1 = arith.constant 0 : i32
    return %c0_i32, %c0_i32_0 : i32, i32
  }
  func.func @transform_7(%arg0: i32) -> (i32, i32, i32) {
    %c0_i32 = arith.constant 0 : i32
    %c0_i32_0 = arith.constant 0 : i32
    %c0_i32_1 = arith.constant 0 : i32
    return %arg0, %c0_i32, %c0_i32_0 : i32, i32, i32
  }
}

</mosaic_0001>

<bundles_post_ra>
// kernel: tpu_custom_call.1
= control target key start
LH: loop header
LB: loop body
LE: loop exit
PB: predicated region body
PF: predicated region fallthrough
CT: control target
= control target key end

     0   :  { %12 = vsyncpa [#allocation3], 0  ;;  %s1540_s0 = inlined_call_operand.vmem [shape: f32[2,32,128], index: 0, kind: input, shape index: {}]   ;;  %s1541_s1 = inlined_call_operand.hbm [shape: f32[16,224], index: 1, kind: input, shape index: {}]   ;;  %s1542_s2 = inlined_call_operand.vmem [shape: f32[16,1], index: 2, kind: input, shape index: {}]   ;;  %s1543_s3 = inlined_call_operand.vmem [shape: f32[32,1], index: 3, kind: input, shape index: {}]   ;;  %s1544_s4 = inlined_call_operand.vmem [shape: f32[32,1], index: 4, kind: input, shape index: {}]   ;;  %s1545_s5 = inlined_call_operand.hbm [shape: f32[32,32], index: 5, kind: input, shape index: {}]   ;;  %s1546_s6 = inlined_call_operand.vmem [shape: f32[7,128], index: 6, kind: input, shape index: {}]   ;;  %s1547_s7 = inlined_call_operand.hbm [shape: f32[2,16,128], index: 7, kind: output, shape index: {}]  }
   0x1   :  { %13 = vsyncpa [#allocation6], 0 }
   0x2   :  { %14 = vsyncpa [#allocation4], 0 }
   0x3   :  { %16 = vsyncpa [#allocation4 + $0x1], 0  ;;  %s1288_s24 = smov 0   ;;  %s1290_s25 = smov 0  }
   0x4   :  { %s1292_s26 = smov 0   ;;  %s1294_s27 = smov 0  }
   0x5 LB: > { %s1309_s28 = sadd.s32 4294967295, %s1229_s27   ;;  %s953_s29 = sadd.s32 4294967294, %s1229_s27   ;;  %s1229_s27 = sphi %s1294_s27, %s1561_s27   ;;  %s1225_s26 = sphi %s1292_s26, %s1560_s26   ;;  %s1221_s25 = sphi %s1290_s25, %s1559_s25   ;;  %s1217_s24 = sphi %s1288_s24, %s1558_s24  }
   0x6   : > { %s1313_s30 = sadd.s32 1, %s1229_s27   ;;  %s181_s8 = sadd.s32 1, %s1225_s26 }
   0x7   : > { %s178_s9 = ssub.s32 %s1229_s27, %s1313_s30  ;;  %p191_p0 = scmp.ne.s32.totalorder %s1225_s26, %s1221_s25 }
   0x8   : > { %p179_p1 = scmp.eq.s32.totalorder %s178_s9, 0  ;;  %p192_p2 = scmp.eq.s32.totalorder %s1309_s28, 1 }
   0x9   : > { %p197_p3 = scmp.ne.s32.totalorder %s1221_s25, %s1217_s24  ;;  %p198_p4 = scmp.eq.s32.totalorder %s953_s29, 1 }
   0xa   : > { %s1324_s10 = scalar_select %p179_p1, %s1225_s26, %s181_s8  }
   0xb   : > { %p1326_p5 = por %p192_p2, %p191_p0  ;;  %p1330_p6 = por %p198_p4, %p197_p3 }
   0xc   : > { %p954_p7 = scmp.ge.s32.totalorder %s1229_s27, 1  ;;  %p205_p8 = scmp.lt.s32.totalorder %s1229_s27, 3 }
   0xd   : > { %s1550_s12 = scalar_select %p1330_p6, 1, 0 }
   0xe   : > { %p1548_p9 = scmp.eq.s32.totalorder %s1309_s28, 0  ;;  %p1337_p10 = pnand %p954_p7, %p205_p8 }
   0xf   : > { %s1231_s14 = smov [#allocation2]   ;;  %s1232_s17 = smov [#allocation5]  }
  0x10   : > { %s217_s15 = sshll.u32 %s1231_s14, 4  ;;  %p1035_p11 = pneg %p1337_p10  ;;  %s218_s15 = int_to_ptr.vmem [resolvable:$true] %s217_s15 }
  0x11   : > { %s239_s18 = sshll.u32 %s1232_s17, 4  ;;  %s1120_s19 = scalar_lea.vmem %s218_s15, 512  ;;  %s240_s18 = int_to_ptr.vmem [resolvable:$true] %s239_s18 }
  0x12   : > { %p1345_p12 = pnand %p1548_p9, %p1035_p11  ;;  %p1121_p0 = scmp.ne.s32.totalorder %s218_s15, %s1120_s19 }
  0x13   : > { %p1128_p3 = scmp.lt.s32.totalorder %s218_s15, %s218_s15  ;;  %p1129_p4 = scmp.lt.s32.totalorder %s1120_s19, %s1120_s19 }
  0x14   : > { %p1111_p13 = pneg %p1345_p12 }
  0x15   : > { %p1130_p7 = por %p1129_p4, %p1128_p3 }
  0x16   : > { %p1123_p1 = pnand %p1121_p0, %p1111_p13 }
  0x18   : > { %p1124_p2 = pneg %p1123_p1 }
  0x1a   : > { %p1131_p8 = pnand %p1130_p7, %p1124_p2 }
  0x1c   : > { %1134 = shalt.err (!%p1131_p8)
}
  0x1d   : > { %s1233_s20 = smov 256   ;;  %s1234_s21 = smov 16  }
  0x1e   : > { %1038 = dma.hbm_to_vmem [thread:$0]  (!%p1345_p12), %s1541_s1, 512, %s218_s15, [#allocation3], %s1233_s20, %s1233_s20, %s1234_s21  }
  0x1f   : > { %s1146_s29 = scalar_lea.vmem %s240_s18, 512  ;;  %p1154_p9 = scmp.lt.s32.totalorder %s240_s18, %s240_s18 }
  0x20   : > { %p1147_p11 = scmp.ne.s32.totalorder %s240_s18, %s1146_s29  ;;  %p1155_p6 = scmp.lt.s32.totalorder %s1146_s29, %s1146_s29 }
  0x22   : > { %p1149_p0 = pnand %p1147_p11, %p1111_p13  ;;  %p1156_p3 = por %p1155_p6, %p1154_p9 }
  0x24   : > { %p1150_p1 = pneg %p1149_p0 }
  0x26   : > { %p1157_p2 = pnand %p1156_p3, %p1150_p1 }
  0x28   : > { %1160 = shalt.err (!%p1157_p2)
}
  0x29   : > { %s1235_s8 = smov 128   ;;  %s1236_s9 = smov 8  }
  0x2a   : > { %1041 = dma.hbm_to_vmem [thread:$0]  (!%p1345_p12), %s1545_s5, 512, %s240_s18, [#allocation6], %s1235_s8, %s1235_s8, %s1236_s9  }
  0x2b   : > { %266 = sbr.rel (%p1337_p10) target bundleno = 1411 (0x583), region = 48  ;;  %p1553_p4 = scmp.eq.s32.totalorder (!%p1337_p10), %s1309_s28, 0 }
  0x30   : > { %1204 = dma.done.wait (%p1553_p4), [#allocation3], 512   ;;  %p1554_p13 = pmov %p1553_p4 }
  0x31   : > { %p1555_p6 = pmov %p1553_p4 }
  0x32   : > { %1206 = vsyncadd (%p1554_p13), [#allocation3], 4294966784 }
  0x33   : > { %1208 = dma.done.wait (%p1555_p6), [#allocation6], 512   ;;  %p1556_p9 = pmov %p1553_p4 }
  0x34   : > { %p302_p7 = scmp.lt.s32.totalorder %s1309_s28, 1  ;;  %v315_v12 = vld [vmem:[#allocation5] sm:$0xff]  ;;  %vm344_vm4 = vcmask 261120   ;;  %v316_v17 = vld [vmem:[#allocation5 + $0x8] sm:$0xff]  ;;  %v317_v18 = vld [vmem:[#allocation5 + $0x10] sm:$0xff]  ;;  %v1237_v20 = vmov 0  }
  0x35   : > { %1210 = vsyncadd (%p1556_p9), [#allocation6], 4294966784  ;;  %1005 = vmatprep.mubr.msk.f32.mxu1 %vm344_vm4, %v315_v12  ;;  %v318_v19 = vld [vmem:[#allocation5 + $0x18] sm:$0xff]  ;;  %1100 = vset.pattern.permute.xlu1 %v1237_v20  ;;  %v308_v43 = vld [vmem:[%s1543_s3 + $0x8] sm:$0xff]  ;;  %s1239_s29 = smov 1   ;;  %s1240_s8 = smov 2  }
  0x36   : > { %s303_s15 = scalar_select %p302_p7, %s1309_s28, 1  ;;  %1099 = vset.pattern.permute.xlu0 %v1237_v20  ;;  %v314_v41 = vld [vmem:[%s1544_s4 + $0x18] sm:$0xff]  ;;  %v309_v44 = vld [vmem:[%s1543_s3 + $0x10] sm:$0xff]  ;;  %vm771_vm5 = vcmask 785408  }
  0x37   : > { %v310_v42 = vld [vmem:[%s1543_s3 + $0x18] sm:$0xff]  ;;  %s1241_s9 = smov 3   ;;  %s1242_s14 = smov 125  }
  0x38   : > { %s979_s16 = sshll.u32 %s303_s15, 5  ;;  %s1243_s17 = smov 126  }
  0x39   : > { %s306_s19 = scalar_lea.vmem %s1540_s0, %s979_s16  ;;  %s1244_s15 = smov 127  }
  0x3a   : > { %v323_v0 = vld [vmem:[%s306_s19 + $0x18] sm:$0xff]  ;;  %v322_v1 = vld [vmem:[%s306_s19 + $0x10] sm:$0xff]  ;;  %v321_v2 = vld [vmem:[%s306_s19 + $0x8] sm:$0xff]  ;;  %s299_s20 = sand.u32 1, %s1221_s25  }
  0x3b   : > { %vm327_vm0 = vcmp.ge.f32.partialorder %v323_v0, 0.0  ;;  %v331_v3 = vmul.f32 0.2, %v323_v0  ;;  %v330_v4 = vmul.f32 0.2, %v322_v1  ;;  %vm326_vm1 = vcmp.ge.f32.partialorder %v322_v1, 0.0 }
  0x3c   : > { %vm325_vm2 = vcmp.ge.f32.partialorder %v321_v2, 0.0  ;;  %v329_v5 = vmul.f32 0.2, %v321_v2  ;;  %v320_v6 = vld [vmem:[%s306_s19] sm:$0xff]  ;;  %s961_s21 = sshll.u32 %s299_s20, 4 }
  0x3d   : > { %v335_v7 = vsel %vm327_vm0, %v323_v0, %v331_v3  ;;  %vm324_vm3 = vcmp.ge.f32.partialorder %v320_v6, 0.0  ;;  %v328_v8 = vmul.f32 0.2, %v320_v6  ;;  %v334_v10 = vsel %vm326_vm1, %v322_v1, %v330_v4  ;;  %v307_v1 = vld [vmem:[%s1543_s3] sm:$0xff]  ;;  %s301_s22 = scalar_lea.vmem [#allocation7], %s961_s21 }
  0x3e   : > { %342 = vadd.xlane.f32.xlu0 %v335_v7  ;;  %v333_v9 = vsel %vm325_vm2, %v321_v2, %v329_v5  ;;  %v313_v2 = vld [vmem:[%s1544_s4 + $0x10] sm:$0xff]  ;;  %v311_v3 = vld [vmem:[%s1544_s4] sm:$0xff]  ;;  %v1238_v4 = vmov 0.0   ;;  %v312_v5 = vld [vmem:[%s1544_s4 + $0x8] sm:$0xff]  ;;  %s869_s23 = sshll.u32 %s301_s22, 4  ;;  %s1493_s23 = int_to_ptr.vmem [resolvable:$true] %s869_s23 }
  0x3f   : > { %338 = vadd.xlane.f32.xlu1 %v333_v9  ;;  %v332_v11 = vsel %vm324_vm3, %v320_v6, %v328_v8  ;;  %778 = vmatprep.subr.mxu0 %v1238_v4 }
  0x42   : > { %340 = vadd.xlane.f32.xlu0 %v334_v10 }
  0x43   : > { %336 = vadd.xlane.f32.xlu1 %v332_v11 }
  0xc7   : > { %v343_v13 = vpop.xlane.xlu0 %342 }
  0xc8   : > { %997 = vmatprep.subr.mxu1 %v343_v13  ;;  %v339_v14 = vpop.xlane.xlu1 %338 }
  0xc9   : > { %998 = vmatpush3.msra.mxu1 %v343_v13 }
  0xcb   : > { %v341_v15 = vpop.xlane.xlu0 %340 }
  0xcc   : > { %999 = vmatprep.subr.mxu1 %v341_v15  ;;  %v337_v16 = vpop.xlane.xlu1 %336 }
  0xcd   : > { %1000 = vmatpush3.msra.mxu1 %v341_v15 }
  0xce   : > { %1001 = vmatprep.subr.mxu1 %v339_v14 }
  0xcf   : > { %1002 = vmatpush3.msra.mxu1 %v339_v14 }
  0xd0   : > { %1003 = vmatprep.subr.mxu1 %v337_v16 }
  0xd1   : > { %1004 = vmatpush3.msra.mxu1 %v337_v16 }
  0xd2   : > { %1006 = vmatmul.mubr.msk.f32.vlgmr.msra.gmra.mxu1 %vm344_vm4, %v316_v17 }
  0xd3   : > { %1008 = vmatprep.mubr.msk.f32.mxu1 %vm344_vm4, %v317_v18 }
  0xd6   : > { %1009 = vmatmul.mubr.msk.f32.gmra.mxu1 %vm344_vm4, %v318_v19 }
  0xd7   : > { %1019 = vmatprep.mubr.msk.f32.mxu1 %vm344_vm4, %v315_v12 }
 0x192   : > { %v1007_v21 = vpop.f32.mrf.mxu1 }
 0x193   : > { %v443_v22 = vmul.f32 0.001953125, %v1007_v21 }
 0x194   : > { %v423_v23 = vpop.f32.mrf.mxu1 }
 0x195   : > { %453 = vperm.xlu1 %1100, %v443_v22   ;;  %v442_v28 = vmul.f32 0.001953125, %v423_v23 }
 0x196   : > { %v1010_v24 = vpop.f32.mrf.mxu1 }
 0x197   : > { %v445_v25 = vmul.f32 0.001953125, %v1010_v24 }
 0x198   : > { %v433_v26 = vpop.f32.mrf.mxu1 }
 0x199   : > { %v444_v27 = vmul.f32 0.001953125, %v433_v26  ;;  %463 = vperm.xlu0 %1099, %v445_v25  }
 0x19b   : > { %458 = vperm.xlu1 %1100, %v444_v27  }
 0x19f   : > { %448 = vperm.xlu1 %1100, %v442_v28  }
 0x210   : > { %v454_v29 = vpop.permute.xlu1 %453 }
 0x211   : > { %v1389_v33 = vsub.f32 %v333_v9, %v454_v29  ;;  %v659_v9 = vlaneseq }
 0x213   : > { %v471_v39 = vmul.f32 %v1389_v33, %v1389_v33  ;;  %v1431_v12 = vshrl.u32 %v659_v9, 7 }
 0x214   : > { %v464_v30 = vpop.permute.xlu0 %463 }
 0x215   : > { %v1387_v31 = vsub.f32 %v335_v7, %v464_v30  ;;  %v701_v16 = vsub.s32 3, %v1431_v12 }
 0x216   : > { %v459_v32 = vpop.permute.xlu1 %458 }
 0x217   : > { %v1391_v34 = vsub.f32 %v334_v10, %v459_v32  ;;  %v473_v35 = vmul.f32 %v1387_v31, %v1387_v31 }
 0x219   : > { %480 = vadd.xlane.f32.xlu1 %v473_v35  ;;  %v472_v36 = vmul.f32 %v1391_v34, %v1391_v34 }
 0x21a   : > { %v449_v37 = vpop.permute.xlu1 %448 }
 0x21b   : > { %v1397_v38 = vsub.f32 %v332_v11, %v449_v37  ;;  %478 = vadd.xlane.f32.xlu0 %v472_v36 }
 0x21d   : > { %476 = vadd.xlane.f32.xlu1 %v471_v39  ;;  %v470_v40 = vmul.f32 %v1397_v38, %v1397_v38  ;;  %v756_v39 = vld [vmem:[#allocation2 + $0x8] sm:$0xff] }
 0x21e   : > { %972 = vmatprep.mubr.msk.f32.mxu0 %vm771_vm5, %v756_v39  ;;  %v755_v39 = vld [vmem:[#allocation2] sm:$0xff] }
 0x221   : > { %474 = vadd.xlane.f32.xlu1 %v470_v40  ;;  %v759_v40 = vld [vmem:[%s1542_s2] sm:$0xff] }
 0x231   : > { %644 = vperm.xlu0 %1099, %v314_v41   ;;  %v760_v41 = vld [vmem:[%s1542_s2 + $0x8] sm:$0xff] }
 0x232   : > { %620 = vperm.xlu1 %1100, %v310_v42   ;;  %v693_v42 = vsub.s32 2, %v1431_v12 }
 0x235   : > { %610 = vperm.xlu0 %1099, %v308_v43  }
 0x236   : > { %615 = vperm.xlu1 %1100, %v309_v44  }
 0x2a2   : > { %v481_v45 = vpop.xlane.xlu1 %480 }
 0x2a3   : > { %1011 = vmatprep.subr.mxu1 %v481_v45 }
 0x2a4   : > { %v479_v46 = vpop.xlane.xlu0 %478  ;;  %1012 = vmatpush3.msra.mxu1 %v481_v45 }
 0x2a5   : > { %1013 = vmatprep.subr.mxu1 %v479_v46 }
 0x2a6   : > { %1014 = vmatpush3.msra.mxu1 %v479_v46  ;;  %v477_v47 = vpop.xlane.xlu1 %476 }
 0x2a7   : > { %1015 = vmatprep.subr.mxu1 %v477_v47 }
 0x2a8   : > { %1016 = vmatpush3.msra.mxu1 %v477_v47  ;;  %v677_v47 = vsub.s32 1, %v1431_v12 }
 0x2aa   : > { %v475_v48 = vpop.xlane.xlu1 %474 }
 0x2ab   : > { %1017 = vmatprep.subr.mxu1 %v475_v48 }
 0x2ac   : > { %1018 = vmatpush3.msra.mxu1 %v475_v48  ;;  %v645_v7 = vpop.permute.xlu0 %644 }
 0x2ad   : > { %1020 = vmatmul.mubr.msk.f32.vlgmr.msra.gmra.mxu1 %vm344_vm4, %v316_v17 }
 0x2ae   : > { %1022 = vmatprep.mubr.msk.f32.mxu1 %vm344_vm4, %v317_v18  ;;  %v621_v6 = vpop.permute.xlu1 %620  ;;  %v1438_v18 = vld [vmem:[%s1546_s6] sm:$0x7f] }
 0x2af   : > { %v702_v24 = vrot.slane %v1438_v18, %v701_v16  ;;  %v694_v43 = vrot.slane %v1438_v18, %v693_v42 }
 0x2b0   : > { %v611_v11 = vpop.permute.xlu0 %610 }
 0x2b1   : > { %1023 = vmatmul.mubr.msk.f32.gmra.mxu1 %vm344_vm4, %v318_v19 }
 0x2b2   : > { %v616_v8 = vpop.permute.xlu1 %615 }
 0x36d   : > { %v1021_v49 = vpop.f32.mrf.mxu1 }
 0x36e   : > { %v568_v50 = vmul.f32 0.001953125, %v1021_v49 }
 0x36f   : > { %v548_v51 = vpop.f32.mrf.mxu1 }
 0x370   : > { %v572_v52 = vadd.f32 1e-05, %v568_v50  ;;  %v567_v53 = vmul.f32 0.001953125, %v548_v51 }
 0x371   : > { %v1024_v54 = vpop.f32.mrf.mxu1 }
 0x372   : > { %1101 = vrsqrt.f32 %v572_v52  ;;  %v571_v55 = vadd.f32 1e-05, %v567_v53  ;;  %v570_v56 = vmul.f32 0.001953125, %v1024_v54  ;;  %v678_v52 = vrot.slane %v1438_v18, %v677_v47 }
 0x373   : > { %v558_v57 = vpop.f32.mrf.mxu1 }
 0x374   : > { %v574_v58 = vadd.f32 1e-05, %v570_v56  ;;  %v569_v59 = vmul.f32 0.001953125, %v558_v57  ;;  %1103 = vrsqrt.f32 %v571_v55  ;;  %v661_v57 = vsub.s32 0, %v1431_v12 }
 0x376   : > { %v573_v60 = vadd.f32 1e-05, %v569_v59  ;;  %1105 = vrsqrt.f32 %v574_v58 }
 0x378   : > { %1107 = vrsqrt.f32 %v573_v60 }
 0x37f   : > { %v1102_v61 = vpop.eup %1101 }
 0x380   : > { %586 = vperm.xlu1 %1100, %v1102_v61  }
 0x381   : > { %v1104_v62 = vpop.eup %1103 }
 0x383   : > { %v1106_v63 = vpop.eup %1105 }
 0x384   : > { %581 = vperm.xlu1 %1100, %v1104_v62   ;;  %v662_v62 = vrot.slane %v1438_v18, %v661_v57 }
 0x385   : > { %v1108_v0 = vpop.eup %1107 }
 0x386   : > { %591 = vperm.xlu0 %1099, %v1108_v0  }
 0x388   : > { %596 = vperm.xlu1 %1100, %v1106_v63  }
 0x38a   : > { %605 = vperm.xlu0 %1099, %v307_v1  }
 0x38c   : > { %639 = vperm.xlu1 %1100, %v313_v2  }
 0x38e   : > { %629 = vperm.xlu0 %1099, %v311_v3   ;;  %v749_v3 = vsub.s32 6, %v1431_v12 }
 0x390   : > { %634 = vperm.xlu1 %1100, %v312_v5   ;;  %v750_v9 = vrot.slane %v1438_v18, %v749_v3 }
 0x3fb   : > { %v587_v10 = vpop.permute.xlu1 %586 }
 0x3fc   : > { %v600_v21 = vmul.f32 %v587_v10, %v1389_v33 }
 0x3fe   : > { %v624_v32 = vmul.f32 %v611_v11, %v600_v21 }
 0x3ff   : > { %v582_v13 = vpop.permute.xlu1 %581 }
 0x400   : > { %v599_v26 = vmul.f32 %v582_v13, %v1397_v38 }
 0x401   : > { %v592_v14 = vpop.permute.xlu0 %591 }
 0x402   : > { %v601_v15 = vmul.f32 %v592_v14, %v1391_v34 }
 0x403   : > { %v597_v17 = vpop.permute.xlu1 %596 }
 0x404   : > { %v602_v19 = vmul.f32 %v597_v17, %v1387_v31  ;;  %v625_v23 = vmul.f32 %v616_v8, %v601_v15  ;;  %v733_v15 = vsub.s32 5, %v1431_v12 }
 0x405   : > { %v606_v20 = vpop.permute.xlu0 %605 }
 0x406   : > { %v626_v22 = vmul.f32 %v621_v6, %v602_v19  ;;  %v623_v30 = vmul.f32 %v606_v20, %v599_v26  ;;  %v734_v21 = vrot.slane %v1438_v18, %v733_v15  ;;  %v717_v26 = vsub.s32 4, %v1431_v12 }
 0x407   : > { %v640_v25 = vpop.permute.xlu1 %639 }
 0x408   : > { %v650_v27 = vadd.f32 %v645_v7, %v626_v22  ;;  %v649_v28 = vadd.f32 %v640_v25, %v625_v23 }
 0x409   : > { %v630_v29 = vpop.permute.xlu0 %629 }
 0x40a   : > { %689 = vrot.lane.b32.xlu1 %v650_v27, %s1239_s29  ;;  %687 = vrot.lane.b32.xlu0 %v649_v28, %s1239_s29  ;;  %v706_v34 = vmul.f32 %v702_v24, %v650_v27  ;;  %v647_v35 = vadd.f32 %v630_v29, %v623_v30  ;;  %v705_v33 = vmul.f32 %v702_v24, %v649_v28 }
 0x40b   : > { %v635_v31 = vpop.permute.xlu1 %634 }
 0x40c   : > { %v648_v36 = vadd.f32 %v635_v31, %v624_v32  ;;  %779 = vmatpush1.msra.mxu0 %v706_v34  ;;  %v703_v38 = vmul.f32 %v702_v24, %v647_v35  ;;  %v718_v32 = vrot.slane %v1438_v18, %v717_v26 }
 0x40d   : > { %780 = vmatprep.subr.mxu0 %v1238_v4 }
 0x40e   : > { %685 = vrot.lane.b32.xlu1 %v648_v36, %s1239_s29  ;;  %781 = vmatpush1.msra.mxu0 %v705_v33  ;;  %v704_v37 = vmul.f32 %v702_v24, %v648_v36 }
 0x40f   : > { %683 = vrot.lane.b32.xlu0 %v647_v35, %s1239_s29  ;;  %782 = vmatprep.subr.mxu0 %v1238_v4  ;;  %s980_s29 = sshll.u32 %s1309_s28, 8  ;;  %s1245_s28 = smov [#allocation7]  }
 0x410   : > { %783 = vmatpush1.msra.mxu0 %v704_v37  ;;  %s1165_s16 = sshll.u32 %s1245_s28, 4  ;;  %s1166_s16 = int_to_ptr.vmem [resolvable:$false] %s1165_s16 }
 0x411   : > { %784 = vmatprep.subr.mxu0 %v1238_v4  ;;  %s1167_s18 = scalar_lea.vmem %s1166_s16, 512  ;;  %p1168_p11 = scmp.lt.s32.totalorder %s1493_s23, %s1166_s16 }
 0x412   : > { %673 = vrot.lane.b32.xlu1 %v650_v27, %s1240_s8  ;;  %785 = vmatpush1.msra.mxu0 %v703_v38 }
 0x413   : > { %671 = vrot.lane.b32.xlu0 %v649_v28, %s1240_s8  ;;  %786 = vmatprep.subr.mxu0 %v1238_v4 }
 0x416   : > { %669 = vrot.lane.b32.xlu1 %v648_v36, %s1240_s8 }
 0x417   : > { %667 = vrot.lane.b32.xlu0 %v647_v35, %s1240_s8 }
 0x41a   : > { %657 = vrot.lane.b32.xlu1 %v650_v27, %s1241_s9 }
 0x41b   : > { %655 = vrot.lane.b32.xlu0 %v649_v28, %s1241_s9 }
 0x41e   : > { %653 = vrot.lane.b32.xlu1 %v648_v36, %s1241_s9 }
 0x41f   : > { %651 = vrot.lane.b32.xlu0 %v647_v35, %s1241_s9 }
 0x422   : > { %745 = vrot.lane.b32.xlu1 %v650_v27, %s1242_s14 }
 0x423   : > { %743 = vrot.lane.b32.xlu0 %v649_v28, %s1242_s14 }
 0x426   : > { %741 = vrot.lane.b32.xlu1 %v648_v36, %s1242_s14 }
 0x427   : > { %739 = vrot.lane.b32.xlu0 %v647_v35, %s1242_s14  ;;  %s1498_s14 = scalar_lea.hbm %s1547_s7, %s980_s29 }
 0x42a   : > { %729 = vrot.lane.b32.xlu1 %v650_v27, %s1243_s17 }
 0x42b   : > { %727 = vrot.lane.b32.xlu0 %v649_v28, %s1243_s17 }
 0x42e   : > { %725 = vrot.lane.b32.xlu1 %v648_v36, %s1243_s17 }
 0x42f   : > { %723 = vrot.lane.b32.xlu0 %v647_v35, %s1243_s17  ;;  %s1500_s17 = scalar_lea.sflag [#allocation4], %s299_s20 }
 0x432   : > { %713 = vrot.lane.b32.xlu1 %v650_v27, %s1244_s15 }
 0x433   : > { %711 = vrot.lane.b32.xlu0 %v649_v28, %s1244_s15 }
 0x436   : > { %709 = vrot.lane.b32.xlu1 %v648_v36, %s1244_s15 }
 0x437   : > { %707 = vrot.lane.b32.xlu0 %v647_v35, %s1244_s15  ;;  %s1161_s15 = scalar_lea.vmem %s1493_s23, 256 }
 0x438   : > { %p1162_p10 = scmp.ne.s32.totalorder %s1493_s23, %s1161_s15  ;;  %p1169_p0 = scmp.lt.s32.totalorder %s1167_s18, %s1161_s15 }
 0x43a   : > { %763 = vperm.xlu1 %1100, %v759_v40   ;;  %v758_v40 = vld [vmem:[#allocation2 + $0x18] sm:$0xff]  ;;  %p1163_p12 = pnand %p1162_p10, %p1326_p5  ;;  %p1170_p1 = por %p1169_p0, %p1168_p11 }
 0x43b   : > { %768 = vperm.xlu0 %1099, %v760_v41   ;;  %v757_v41 = vld [vmem:[#allocation2 + $0x10] sm:$0xff] }
 0x43c   : > { %p1164_p8 = pneg %p1163_p12 }
 0x43e   : > { %p1171_p3 = pnand %p1170_p1, %p1164_p8 }
 0x47c   : > { %v690_v44 = vpop.permute.xlu1 %689  ;;  %v688_v45 = vpop.permute.xlu0 %687 }
 0x47d   : > { %v698_v46 = vmul.f32 %v694_v43, %v690_v44  ;;  %v697_v48 = vmul.f32 %v694_v43, %v688_v45 }
 0x47f   : > { %787 = vmatpush1.msra.mxu0 %v698_v46 }
 0x480   : > { %v686_v49 = vpop.permute.xlu1 %685  ;;  %788 = vmatprep.subr.mxu0 %v1238_v4 }
 0x481   : > { %v696_v50 = vmul.f32 %v694_v43, %v686_v49  ;;  %v684_v51 = vpop.permute.xlu0 %683  ;;  %789 = vmatpush1.msra.mxu0 %v697_v48 }
 0x482   : > { %790 = vmatprep.subr.mxu0 %v1238_v4  ;;  %v695_v53 = vmul.f32 %v694_v43, %v684_v51 }
 0x483   : > { %791 = vmatpush1.msra.mxu0 %v696_v50 }
 0x484   : > { %v674_v54 = vpop.permute.xlu1 %673  ;;  %792 = vmatprep.subr.mxu0 %v1238_v4 }
 0x485   : > { %v682_v55 = vmul.f32 %v678_v52, %v674_v54  ;;  %v672_v56 = vpop.permute.xlu0 %671  ;;  %793 = vmatpush1.msra.mxu0 %v695_v53 }
 0x486   : > { %794 = vmatprep.subr.mxu0 %v1238_v4  ;;  %v681_v58 = vmul.f32 %v678_v52, %v672_v56 }
 0x487   : > { %795 = vmatpush1.msra.mxu0 %v682_v55 }
 0x488   : > { %v670_v59 = vpop.permute.xlu1 %669  ;;  %796 = vmatprep.subr.mxu0 %v1238_v4 }
 0x489   : > { %v680_v60 = vmul.f32 %v678_v52, %v670_v59  ;;  %v668_v61 = vpop.permute.xlu0 %667  ;;  %797 = vmatpush1.msra.mxu0 %v681_v58 }
 0x48a   : > { %798 = vmatprep.subr.mxu0 %v1238_v4  ;;  %v679_v63 = vmul.f32 %v678_v52, %v668_v61 }
 0x48b   : > { %799 = vmatpush1.msra.mxu0 %v680_v60 }
 0x48c   : > { %v658_v0 = vpop.permute.xlu1 %657  ;;  %800 = vmatprep.subr.mxu0 %v1238_v4 }
 0x48d   : > { %v666_v1 = vmul.f32 %v662_v62, %v658_v0  ;;  %v656_v2 = vpop.permute.xlu0 %655  ;;  %801 = vmatpush1.msra.mxu0 %v679_v63 }
 0x48e   : > { %802 = vmatprep.subr.mxu0 %v1238_v4  ;;  %v665_v5 = vmul.f32 %v662_v62, %v656_v2 }
 0x48f   : > { %803 = vmatpush1.msra.mxu0 %v666_v1 }
 0x490   : > { %v654_v6 = vpop.permute.xlu1 %653  ;;  %804 = vmatprep.subr.mxu0 %v1238_v4 }
 0x491   : > { %v664_v7 = vmul.f32 %v662_v62, %v654_v6  ;;  %v652_v8 = vpop.permute.xlu0 %651  ;;  %805 = vmatpush1.msra.mxu0 %v665_v5 }
 0x492   : > { %806 = vmatprep.subr.mxu0 %v1238_v4  ;;  %v663_v10 = vmul.f32 %v662_v62, %v652_v8 }
 0x493   : > { %807 = vmatpush1.msra.mxu0 %v664_v7 }
 0x494   : > { %v746_v11 = vpop.permute.xlu1 %745  ;;  %808 = vmatprep.subr.mxu0 %v1238_v4 }
 0x495   : > { %v754_v13 = vmul.f32 %v750_v9, %v746_v11  ;;  %v744_v14 = vpop.permute.xlu0 %743  ;;  %809 = vmatpush1.msra.mxu0 %v663_v10 }
 0x496   : > { %818 = vmatprep.subr.mxu0 %v1238_v4  ;;  %v753_v16 = vmul.f32 %v750_v9, %v744_v14 }
 0x497   : > { %819 = vmatpush2.msra.mxu0 %v754_v13 }
 0x498   : > { %v742_v17 = vpop.permute.xlu1 %741  ;;  %820 = vmatprep.subr.mxu0 %v1238_v4 }
 0x499   : > { %v752_v19 = vmul.f32 %v750_v9, %v742_v17  ;;  %v740_v20 = vpop.permute.xlu0 %739  ;;  %821 = vmatpush2.msra.mxu0 %v753_v16 }
 0x49a   : > { %822 = vmatprep.subr.mxu0 %v1238_v4  ;;  %v751_v22 = vmul.f32 %v750_v9, %v740_v20 }
 0x49b   : > { %823 = vmatpush2.msra.mxu0 %v752_v19 }
 0x49c   : > { %v730_v23 = vpop.permute.xlu1 %729  ;;  %824 = vmatprep.subr.mxu0 %v1238_v4 }
 0x49d   : > { %v738_v24 = vmul.f32 %v734_v21, %v730_v23  ;;  %v728_v25 = vpop.permute.xlu0 %727  ;;  %825 = vmatpush2.msra.mxu0 %v751_v22 }
 0x49e   : > { %826 = vmatprep.subr.mxu0 %v1238_v4  ;;  %v737_v27 = vmul.f32 %v734_v21, %v728_v25 }
 0x49f   : > { %827 = vmatpush2.msra.mxu0 %v738_v24 }
 0x4a0   : > { %v726_v28 = vpop.permute.xlu1 %725  ;;  %828 = vmatprep.subr.mxu0 %v1238_v4 }
 0x4a1   : > { %v736_v29 = vmul.f32 %v734_v21, %v726_v28  ;;  %v724_v30 = vpop.permute.xlu0 %723  ;;  %829 = vmatpush2.msra.mxu0 %v737_v27 }
 0x4a2   : > { %830 = vmatprep.subr.mxu0 %v1238_v4  ;;  %v735_v34 = vmul.f32 %v734_v21, %v724_v30 }
 0x4a3   : > { %831 = vmatpush2.msra.mxu0 %v736_v29 }
 0x4a4   : > { %v714_v31 = vpop.permute.xlu1 %713  ;;  %832 = vmatprep.subr.mxu0 %v1238_v4 }
 0x4a5   : > { %v722_v12 = vmul.f32 %v718_v32, %v714_v31  ;;  %v712_v35 = vpop.permute.xlu0 %711  ;;  %833 = vmatpush2.msra.mxu0 %v735_v34 }
 0x4a6   : > { %834 = vmatprep.subr.mxu0 %v1238_v4  ;;  %v721_v36 = vmul.f32 %v718_v32, %v712_v35 }
 0x4a7   : > { %835 = vmatpush2.msra.mxu0 %v722_v12 }
 0x4a8   : > { %v710_v33 = vpop.permute.xlu1 %709  ;;  %836 = vmatprep.subr.mxu0 %v1238_v4 }
 0x4a9   : > { %v720_v37 = vmul.f32 %v718_v32, %v710_v33  ;;  %v708_v18 = vpop.permute.xlu0 %707  ;;  %837 = vmatpush2.msra.mxu0 %v721_v36 }
 0x4aa   : > { %838 = vmatprep.subr.mxu0 %v1238_v4  ;;  %v719_v38 = vmul.f32 %v718_v32, %v708_v18 }
 0x4ab   : > { %839 = vmatpush2.msra.mxu0 %v720_v37 }
 0x4ac   : > { %840 = vmatprep.subr.mxu0 %v1238_v4 }
 0x4ad   : > { %841 = vmatpush2.msra.mxu0 %v719_v38 }
 0x4ae   : > { %843 = vmatmul.mubr.f32.vlgmr.msra.gmra.mxu0 %v755_v39 }
 0x4af   : > { %973 = vmatprep.mubr.msk.f32.mxu0 %vm771_vm5, %v758_v40 }
 0x4b2   : > { %848 = vmatmul.mubr.f32.gmra.mxu0 %v757_v41 }
 0x4b5   : > { %v764_v42 = vpop.permute.xlu1 %763 }
 0x4b6   : > { %v769_v46 = vpop.permute.xlu0 %768 }
 0x56e   : > { %v844_v43 = vpop.f32.mrf.mxu0 }
 0x56f   : > { %v845_v44 = vadd.f32 %v844_v43, %v764_v42 }
 0x570   : > { %v846_v45 = vpop.f32.mrf.mxu0 }
 0x571   : > { %853 = vst [vmem:[%s301_s22] sm:$0xff] %v845_v44 }
 0x572   : > { %v849_v4 = vpop.f32.mrf.mxu0 }
 0x573   : > { %v850_v47 = vadd.f32 %v849_v4, %v769_v46 }
 0x574   : > { %v851_v48 = vpop.f32.mrf.mxu0 }
 0x575   : > { %854 = vst [vmem:[%s301_s22 + $0x8] sm:$0xff] %v850_v47 }
 0x576   : > { %1174 = shalt.err (!%p1171_p3)
}
 0x577   : > { %s1175_s13 = scalar_lea.hbm %s1498_s14, 256  ;;  %s1179_s21 = scalar_lea.hbm %s1547_s7, 512 }
 0x578   : > { %p1176_p2 = scmp.ne.s32.totalorder %s1498_s14, %s1175_s13  ;;  %p1180_p6 = scmp.lt.s32.totalorder %s1498_s14, %s1547_s7 }
 0x579   : > { %p1181_p9 = scmp.lt.s32.totalorder %s1179_s21, %s1175_s13 }
 0x57a   : > { %p1177_p4 = pnand %p1176_p2, %p1326_p5 }
 0x57b   : > { %p1182_p7 = por %p1181_p9, %p1180_p6 }
 0x57c   : > { %p1178_p13 = pneg %p1177_p4 }
 0x57e   : > { %p1183_p10 = pnand %p1182_p7, %p1178_p13 }
 0x580   : > { %1186 = shalt.err (!%p1183_p10)
}
 0x581   : > { %s1246_s8 = smov 128   ;;  %s1247_s9 = smov 8  }
 0x582   : > { %1033 = dma.vmem_to_hbm [thread:$0]  (%p1326_p5), %s1493_s23, 256, %s1498_s14, %s1500_s17, %s1246_s8, %s1246_s8, %s1247_s9  }
 0x583 PF: > { %p1050_p12 = scmp.ge.s32.totalorder %s1229_s27, 2  ;;  %s884_s15 = sand.u32 1, %s1217_s24  }
 0x584   : > { %p1557_p8 = scmp.ne.s32.totalorder %s1550_s12, 0  ;;  %s885_s28 = scalar_lea.sflag [#allocation4], %s884_s15 }
 0x586   : > { %p1043_p11 = pnand %p1050_p12, %p1557_p8 }
 0x588   : > { %p1044_p0 = pneg %p1043_p11 }
 0x58a   : > { %1212 = dma.done.wait (%p1044_p0), %s885_s28, 256  }
 0x58b   : > { %1214 = vsyncadd (%p1044_p0), %s885_s28, 4294967040  ;;  %p19_p1 = scmp.ge.s32.totalorder %s1313_s30, 4   ;;  %s1558_s24 = smov %s1221_s25 }
 0x58c   : > { %s1559_s25 = smov %s1225_s26  ;;  %s1560_s26 = smov %s1324_s10 }
 0x58d   : > { %s1561_s27 = smov %s1313_s30  ;;  %21 = sbr.rel (!%p19_p1) target bundleno = 5 (0x5), region = 92 }
 0x592   :  { %890 = vsyncpa [#allocation3], 1 }
 0x593   :  { %892 = vsyncpa [#allocation3 + $0x1], 1 }
 0x594   :  { %893 = vsyncpa [#allocation6], 1 }
 0x595   :  { %894 = vsyncpa [#allocation4], 1 }
 0x596   :  { %896 = vsyncpa [#allocation4 + $0x1], 1 }

</bundles_post_ra>
